<compile_context>
chip_gen: v6e
topology: v6e:2x2x1
jax: 0.10.0
libtpu: 0.0.40
codegen_flags: <defaults>
</compile_context>

<pallas_src>
import functools

import jax
import jax.numpy as jnp
from jax.experimental import pallas as pl
from jax.experimental.pallas import tpu as pltpu


def _round_up(x, m):
    return (x + m - 1) // m * m


def _vmem_capacity_bytes():
    """Physical VMEM per TensorCore (trace-time query), with a conservative fallback."""
    try:
        info = pltpu.get_tpu_info()
        cap = getattr(info, "vmem_capacity_bytes", None)
        if cap:
            return int(cap)
    except Exception:
        pass
    return 64 * 1024 * 1024  # v7x per-TC size; safe lower bound


def _ffn_kernel(x_ref, w13_ref, w2_ref, o_ref, acc_ref, *, ti):
    # x_ref:   (tm, Hp)          token tile, compute dtype (bf16)
    # w13_ref: (1, Hp, 2*ti)     fused [w1^T | w3^T] tile for intermediate tile j
    # w2_ref:  (1, ti, Hp)       w2^T tile for intermediate tile j
    # o_ref:   (tm, Hp)          output (x.dtype)
    # acc_ref: (tm, Hp) f32      output accumulator over the I (reduction) axis
    j = pl.program_id(1)

    # Single fused gate matmul on the MXU, f32 accumulation.
    h13 = jnp.dot(x_ref[...], w13_ref[0], preferred_element_type=jnp.float32)
    h1 = h13[:, :ti]
    h3 = h13[:, ti:]

    # SwiGLU gating in f32; the divide goes to the EUP (approx reciprocal).
    gated = (h1 * pl.reciprocal(1.0 + jnp.exp(-h1), approx=True)) * h3

    # Down-projection partial for this I tile (bf16 on the MXU, f32 accumulate).
    partial = jnp.dot(
        gated.astype(w2_ref.dtype), w2_ref[0], preferred_element_type=jnp.float32
    )

    @pl.when(j == 0)
    def _():
        acc_ref[...] = partial

    @pl.when(j > 0)
    def _():
        acc_ref[...] += partial

    @pl.when(j == pl.num_programs(1) - 1)
    def _():
        o_ref[...] = acc_ref[...].astype(o_ref.dtype)


def prepare_ffn_weights(w1, w2, w3, *, ti=512, compute_dtype=jnp.bfloat16):
    """One-time weight preparation (do at model init, NOT per forward call).

    w1, w3: (I, H)  (PyTorch nn.Linear(hidden, intermediate).weight)
    w2:     (H, I)  (PyTorch nn.Linear(intermediate, hidden).weight)

    Returns (w13, w2t, ti):
      w13: (n_i, Hp, 2*ti)  per-I-tile contiguous fused [w1^T | w3^T], compute_dtype
      w2t: (n_i, ti, Hp)    per-I-tile contiguous w2^T, compute_dtype
      ti:  effective intermediate tile size (multiple of 128)
    """
    I, H = w1.shape
    Hp = _round_up(H, 128)
    ti = min(_round_up(ti, 128), _round_up(I, 128))
    Ip = _round_up(I, ti)
    n_i = Ip // ti
    dt = compute_dtype

    w1t = jnp.zeros((Hp, Ip), dt).at[:H, :I].set(w1.T.astype(dt))
    w3t = jnp.zeros((Hp, Ip), dt).at[:H, :I].set(w3.T.astype(dt))
    w2p = jnp.zeros((Ip, Hp), dt).at[:I, :H].set(w2.T.astype(dt))

    # Per-I-tile contiguous layout: one linear DMA per grid step.
    w13 = jnp.concatenate(
        [w1t.reshape(Hp, n_i, ti), w3t.reshape(Hp, n_i, ti)], axis=-1
    ).transpose(1, 0, 2)                      # (n_i, Hp, 2*ti)
    w2t = w2p.reshape(n_i, ti, Hp)            # (n_i, ti, Hp)
    return w13, w2t, ti


@functools.partial(jax.jit, static_argnames=("ti", "tm", "vmem_limit_bytes"))
def _feed_forward_impl(x, w13, w2t, *, ti, tm, vmem_limit_bytes):
    B, S, H = x.shape
    n_i, _, Hp = w2t.shape
    M = B * S

    # Token tile: large (sets arithmetic intensity vs. weight re-streaming) but no
    # bigger than the padded token count.
    tm_eff = min(tm, _round_up(M, 8))
    # Megacore (v7x: 2 TCs): keep >=2 token tiles when splitting still yields
    # MXU-sized tiles, so the "parallel" axis can be sharded across cores.
    if _round_up(M, tm_eff) // tm_eff < 2 and M >= 256:
        tm_eff = _round_up((M + 1) // 2, 8)
    Mp = _round_up(M, tm_eff)

    cdt = w13.dtype  # compute dtype (bf16 by default)
    xp = jnp.zeros((Mp, Hp), cdt).at[:M, :H].set(x.reshape(M, H).astype(cdt))

    kernel = functools.partial(_ffn_kernel, ti=ti)
    out = pl.pallas_call(
        kernel,
        out_shape=jax.ShapeDtypeStruct((Mp, Hp), x.dtype),
        grid_spec=pltpu.PrefetchScalarGridSpec(
            num_scalar_prefetch=0,
            grid=(Mp // tm_eff, n_i),
            in_specs=[
                pl.BlockSpec((tm_eff, Hp), lambda i, j: (i, 0)),        # x tile (held over j)
                pl.BlockSpec((1, Hp, 2 * ti), lambda i, j: (j, 0, 0)),  # fused w1^T|w3^T tile
                pl.BlockSpec((1, ti, Hp), lambda i, j: (j, 0, 0)),      # w2^T tile
            ],
            out_specs=pl.BlockSpec((tm_eff, Hp), lambda i, j: (i, 0)),
            scratch_shapes=[pltpu.VMEM((tm_eff, Hp), jnp.float32)],
        ),
        compiler_params=pltpu.CompilerParams(
            dimension_semantics=("parallel", "arbitrary"),
            vmem_limit_bytes=vmem_limit_bytes,
        ),
    )(xp, w13, w2t)

    return out[:M, :H].reshape(B, S, H)


def feed_forward(x, w13, w2t, *, ti, tm=None, vmem_limit_bytes=None):
    """x: [B, S, H]; (w13, w2t, ti) from prepare_ffn_weights. Eval-mode dropout."""
    if tm is None or vmem_limit_bytes is None:
        cap = _vmem_capacity_bytes()
        if vmem_limit_bytes is None:
            # Headroom for matmul temps + Pallas double buffers inside the scoped limit.
            vmem_limit_bytes = min(int(cap * 0.85), 112 * 1024 * 1024)
        if tm is None:
            # v5e/v6e (128 MiB VMEM): tm=1024; v7x (64 MiB VMEM): tm=512.
            tm = 1024 if cap >= 96 * 1024 * 1024 else 512
    return _feed_forward_impl(
        x, w13, w2t, ti=int(ti), tm=int(tm), vmem_limit_bytes=int(vmem_limit_bytes)
    )


def _reference(x, w1, w2, w3):
    h1 = jnp.einsum("bsh,ih->bsi", x, w1)
    h3 = jnp.einsum("bsh,ih->bsi", x, w3)
    gated = (h1 * jax.nn.sigmoid(h1)) * h3
    return jnp.einsum("bsi,hi->bsh", gated, w2)


if __name__ == "__main__":
    # Small shapes consistent with the module: batch=2, seq=8, hidden=32, intermediate=64.
    B, S, H, I = 2, 8, 32, 64

    key = jax.random.PRNGKey(0)
    kx, k1, k2, k3 = jax.random.split(key, 4)

    x = jax.random.normal(kx, (B, S, H), dtype=jnp.float32)
    # nn.Linear(hidden, intermediate, bias=False).weight: (intermediate, hidden)
    w1 = jax.random.normal(k1, (I, H), dtype=jnp.float32) * 0.05
    w3 = jax.random.normal(k3, (I, H), dtype=jnp.float32) * 0.05
    # nn.Linear(intermediate, hidden, bias=False).weight: (hidden, intermediate)
    w2 = jax.random.normal(k2, (H, I), dtype=jnp.float32) * 0.05

    # One-time weight prep (amortized at model init in real use). bf16 compute path.
    w13, w2t, ti = prepare_ffn_weights(w1, w2, w3, ti=512)

    out = feed_forward(x, w13, w2t, ti=ti)
    out = jax.block_until_ready(out)

    ref = _reference(x, w1, w2, w3)
    assert out.shape == (B, S, H)
    # bf16 matmul inputs vs. an all-f32 reference -> loosened tolerances.
    assert jnp.allclose(out, ref, atol=2e-2, rtol=2e-2), "mismatch vs reference"

    print("KERNEL_OK")
</pallas_src>

<mosaic_0001>
module attributes {stable_mosaic.version = 11 : i64} {
  func.func @_ffn_kernel(%arg0: i32, %arg1: i32, %arg2: memref<16x128xbf16, #tpu.memory_space<vmem>>, %arg3: memref<1x128x256xbf16, #tpu.memory_space<vmem>>, %arg4: memref<1x128x128xbf16, #tpu.memory_space<vmem>>, %arg5: memref<16x128xf32, #tpu.memory_space<vmem>>, %arg6: memref<16x128xf32, #tpu.memory_space<vmem>>) attributes {dimension_semantics = [#tpu.dimension_semantics<parallel>, #tpu.dimension_semantics<arbitrary>], iteration_bounds = array<i64: 1, 1>, scalar_prefetch = 0 : i64, scratch_operands = 1 : i64, tpu.core_type = #tpu.core_type<tc>, window_params = [{transform_indices = @transform_0, window_bounds = array<i64: 16, 128>}, {transform_indices = @transform_1, window_bounds = array<i64: 1, 128, 256>}, {transform_indices = @transform_2, window_bounds = array<i64: 1, 128, 128>}, {transform_indices = @transform_3, window_bounds = array<i64: 16, 128>}]} {
    %c0 = arith.constant 0 : index
    %c0_0 = arith.constant 0 : index
    %0 = vector.load %arg2[%c0, %c0_0] : memref<16x128xbf16, #tpu.memory_space<vmem>>, vector<16x128xbf16>
    %c0_1 = arith.constant 0 : index
    %c0_2 = arith.constant 0 : index
    %c0_3 = arith.constant 0 : index
    %1 = vector.load %arg3[%c0_1, %c0_2, %c0_3] : memref<1x128x256xbf16, #tpu.memory_space<vmem>>, vector<1x128x256xbf16>
    %2 = vector.shape_cast %1 : vector<1x128x256xbf16> to vector<128x256xbf16>
    %cst = arith.constant dense<0.000000e+00> : vector<16x256xf32>
    %3 = tpu.matmul %0, %2, %cst {dimension_numbers = #tpu.dot_dimension_numbers<[1], [0], [0], [1], [0, 0, 1, 1], [], []>} : vector<16x128xbf16>, vector<128x256xbf16>, vector<16x256xf32> -> vector<16x256xf32>
    %4 = vector.extract_strided_slice %3 {offsets = [0, 0], sizes = [16, 128], strides = [1, 1]} : vector<16x256xf32> to vector<16x128xf32>
    %5 = vector.extract_strided_slice %3 {offsets = [0, 128], sizes = [16, 128], strides = [1, 1]} : vector<16x256xf32> to vector<16x128xf32>
    %cst_4 = arith.constant 0.000000e+00 : f32
    %6 = vector.broadcast %cst_4 : f32 to vector<16x128xf32>
    %7 = arith.subf %6, %4 : vector<16x128xf32>
    %8 = math.exp %7 : vector<16x128xf32>
    %cst_5 = arith.constant 1.000000e+00 : f32
    %9 = vector.broadcast %cst_5 : f32 to vector<16x128xf32>
    %10 = arith.addf %9, %8 : vector<16x128xf32>
    %11 = tpu.reciprocal %10 {approx = true} : vector<16x128xf32> -> vector<16x128xf32>
    %12 = arith.mulf %4, %11 : vector<16x128xf32>
    %13 = arith.mulf %12, %5 : vector<16x128xf32>
    %14 = arith.truncf %13 : vector<16x128xf32> to vector<16x128xbf16>
    %c0_6 = arith.constant 0 : index
    %c0_7 = arith.constant 0 : index
    %c0_8 = arith.constant 0 : index
    %15 = vector.load %arg4[%c0_6, %c0_7, %c0_8] : memref<1x128x128xbf16, #tpu.memory_space<vmem>>, vector<1x128x128xbf16>
    %16 = vector.shape_cast %15 : vector<1x128x128xbf16> to vector<128x128xbf16>
    %cst_9 = arith.constant dense<0.000000e+00> : vector<16x128xf32>
    %17 = tpu.matmul %14, %16, %cst_9 {dimension_numbers = #tpu.dot_dimension_numbers<[1], [0], [0], [1], [0, 0, 1, 1], [], []>} : vector<16x128xbf16>, vector<128x128xbf16>, vector<16x128xf32> -> vector<16x128xf32>
    %c0_i32 = arith.constant 0 : i32
    %18 = arith.cmpi eq, %arg1, %c0_i32 : i32
    %19 = arith.extui %18 : i1 to i32
    %c0_i32_10 = arith.constant 0 : i32
    %20 = arith.cmpi ne, %19, %c0_i32_10 : i32
    scf.if %20 {
      %c0_15 = arith.constant 0 : index
      %c0_16 = arith.constant 0 : index
      %27 = vector.load %arg6[%c0_15, %c0_16] : memref<16x128xf32, #tpu.memory_space<vmem>>, vector<16x128xf32>
      tpu.vector_store %arg6[%c0_15, %c0_16], %17 {strides = array<i32>} : memref<16x128xf32, #tpu.memory_space<vmem>>, vector<16x128xf32>,
    } else {
    }
    %c0_i32_11 = arith.constant 0 : i32
    %21 = arith.cmpi sgt, %arg1, %c0_i32_11 : i32
    %22 = arith.extui %21 : i1 to i32
    %c0_i32_12 = arith.constant 0 : i32
    %23 = arith.cmpi ne, %22, %c0_i32_12 : i32
    scf.if %23 {
      %c0_15 = arith.constant 0 : index
      %c0_16 = arith.constant 0 : index
      %27 = vector.load %arg6[%c0_15, %c0_16] : memref<16x128xf32, #tpu.memory_space<vmem>>, vector<16x128xf32>
      %28 = arith.addf %27, %17 : vector<16x128xf32>
      %c0_17 = arith.constant 0 : index
      %c0_18 = arith.constant 0 : index
      %29 = vector.load %arg6[%c0_17, %c0_18] : memref<16x128xf32, #tpu.memory_space<vmem>>, vector<16x128xf32>
      tpu.vector_store %arg6[%c0_17, %c0_18], %28 {strides = array<i32>} : memref<16x128xf32, #tpu.memory_space<vmem>>, vector<16x128xf32>,
    } else {
    }
    %c0_i32_13 = arith.constant 0 : i32
    %24 = arith.cmpi eq, %arg1, %c0_i32_13 : i32
    %25 = arith.extui %24 : i1 to i32
    %c0_i32_14 = arith.constant 0 : i32
    %26 = arith.cmpi ne, %25, %c0_i32_14 : i32
    scf.if %26 {
      %c0_15 = arith.constant 0 : index
      %c0_16 = arith.constant 0 : index
      %27 = vector.load %arg6[%c0_15, %c0_16] : memref<16x128xf32, #tpu.memory_space<vmem>>, vector<16x128xf32>
      %c0_17 = arith.constant 0 : index
      %c0_18 = arith.constant 0 : index
      %28 = vector.load %arg5[%c0_17, %c0_18] : memref<16x128xf32, #tpu.memory_space<vmem>>, vector<16x128xf32>
      tpu.vector_store %arg5[%c0_17, %c0_18], %27 {strides = array<i32>} : memref<16x128xf32, #tpu.memory_space<vmem>>, vector<16x128xf32>,
    } else {
    }
    return
  }
  func.func @transform_0(%arg0: i32, %arg1: i32) -> (i32, i32) {
    %c0_i32 = arith.constant 0 : i32
    %c0_i32_0 = arith.constant 0 : i32
    return %arg0, %c0_i32 : i32, i32
  }
  func.func @transform_1(%arg0: i32, %arg1: i32) -> (i32, i32, i32) {
    %c0_i32 = arith.constant 0 : i32
    %c0_i32_0 = arith.constant 0 : i32
    %c0_i32_1 = arith.constant 0 : i32
    return %arg1, %c0_i32, %c0_i32_0 : i32, i32, i32
  }
  func.func @transform_2(%arg0: i32, %arg1: i32) -> (i32, i32, i32) {
    %c0_i32 = arith.constant 0 : i32
    %c0_i32_0 = arith.constant 0 : i32
    %c0_i32_1 = arith.constant 0 : i32
    return %arg1, %c0_i32, %c0_i32_0 : i32, i32, i32
  }
  func.func @transform_3(%arg0: i32, %arg1: i32) -> (i32, i32) {
    %c0_i32 = arith.constant 0 : i32
    %c0_i32_0 = arith.constant 0 : i32
    return %arg0, %c0_i32 : i32, i32
  }
}

</mosaic_0001>

<bundles_post_ra>
// kernel: _feed_forward_impl.1
= control target key start
LH: loop header
LB: loop body
LE: loop exit
PB: predicated region body
PF: predicated region fallthrough
CT: control target
= control target key end

     0   :  { %8 = vsyncpa [#allocation4], 0  ;;  %s531_s0 = inlined_call_operand.vmem [shape: bf16[16,128], index: 0, kind: input, shape index: {}]   ;;  %s532_s1 = inlined_call_operand.hbm [shape: bf16[1,128,256], index: 1, kind: input, shape index: {}]   ;;  %s533_s2 = inlined_call_operand.hbm [shape: bf16[1,128,128], index: 2, kind: input, shape index: {}]   ;;  %s534_s3 = inlined_call_operand.vmem [shape: f32[16,128], index: 3, kind: output, shape index: {}]  }
   0x1   :  { %9 = vsyncpa [#allocation6], 0  ;;  %s487_s12 = smov [#allocation3]  }
   0x2   :  { %s17_s13 = sshll.u32 %s487_s12, 4  ;;  %s18_s13 = int_to_ptr.vmem [resolvable:$true] %s17_s13 }
   0x3   :  { %s451_s14 = scalar_lea.vmem %s18_s13, 2048  ;;  %p456_p1 = scmp.lt.s32.totalorder %s18_s13, %s18_s13 }
   0x4   :  { %p452_p0 = scmp.ne.s32.totalorder %s18_s13, %s451_s14  ;;  %p457_p2 = scmp.lt.s32.totalorder %s451_s14, %s451_s14 }
   0x6   :  { %p458_p3 = por %p457_p2, %p456_p1 }
   0x8   :  { %p459_p4 = pnand %p458_p3, %p452_p0 }
   0xa   :  { %462 = shalt.err (!%p459_p4)
}
   0xb   :  { %s488_s15 = smov 128   ;;  %s489_s16 = smov 8  }
   0xc   :  { %23 = dma.hbm_to_vmem [thread:$0]  %s532_s1, 2048, %s18_s13, [#allocation4], %s488_s15, %s488_s15, %s489_s16  }
   0xd   :  { %s490_s19 = smov [#allocation5]  }
   0xe   :  { %s29_s20 = sshll.u32 %s490_s19, 4  ;;  %s30_s20 = int_to_ptr.vmem [resolvable:$true] %s29_s20 }
   0xf   :  { %s471_s21 = scalar_lea.vmem %s30_s20, 1024  ;;  %p476_p6 = scmp.lt.s32.totalorder %s30_s20, %s30_s20 }
  0x10   :  { %p472_p5 = scmp.ne.s32.totalorder %s30_s20, %s471_s21  ;;  %p477_p7 = scmp.lt.s32.totalorder %s471_s21, %s471_s21 }
  0x12   :  { %p478_p8 = por %p477_p7, %p476_p6 }
  0x14   :  { %p479_p9 = pnand %p478_p8, %p472_p5 }
  0x16   :  { %482 = shalt.err (!%p479_p9)
}
  0x17   :  { %s491_s22 = smov 64   ;;  %s492_s23 = smov 4  }
  0x18   :  { %35 = dma.hbm_to_vmem [thread:$0]  %s533_s2, 1024, %s30_s20, [#allocation6], %s491_s22, %s491_s22, %s492_s23  }
  0x19   :  { %483 = dma.done.wait [#allocation4], 2048  }
  0x1a   :  { %484 = vsyncadd [#allocation4], 4294965248 }
  0x1b   :  { %485 = dma.done.wait [#allocation6], 1024  }
  0x1c   :  { %486 = vsyncadd [#allocation6], 4294966272  ;;  %v493_v0 = vmov 0   ;;  %v402_v1 = vld [vmem:[#allocation3 + $0x74] ss:$8 sps:$4 sm:$0xff]   ;;  %v426_v17 = vld [vmem:[%s531_s0] sm:$0xff]  }
  0x1d   :  { %179 = vmatprep.mubr.bf16.mxu0 %v493_v0  ;;  %v404_v2 = vld [vmem:[#allocation3 + $0x70] ss:$8 sps:$4 sm:$0xff]   ;;  %147 = vmatprep.subr.bf16.mxu0 %v402_v1  ;;  %v405_v3 = vld [vmem:[#allocation3 + $0x64] ss:$8 sps:$4 sm:$0xff]   ;;  %v407_v4 = vld [vmem:[#allocation3 + $0x60] ss:$8 sps:$4 sm:$0xff]  }
  0x1e   :  { %148 = vmatpush1.bf16.msra.mxu0 %v404_v2  ;;  %v408_v5 = vld [vmem:[#allocation3 + $0x54] ss:$8 sps:$4 sm:$0xff]   ;;  %v410_v6 = vld [vmem:[#allocation3 + $0x50] ss:$8 sps:$4 sm:$0xff]   ;;  %v411_v7 = vld [vmem:[#allocation3 + $0x44] ss:$8 sps:$4 sm:$0xff]  }
  0x1f   :  { %149 = vmatprep.subr.bf16.mxu0 %v405_v3  ;;  %v413_v8 = vld [vmem:[#allocation3 + $0x40] ss:$8 sps:$4 sm:$0xff]   ;;  %v414_v9 = vld [vmem:[#allocation3 + $0x34] ss:$8 sps:$4 sm:$0xff]   ;;  %v416_v10 = vld [vmem:[#allocation3 + $0x30] ss:$8 sps:$4 sm:$0xff]  }
  0x20   :  { %v417_v11 = vld [vmem:[#allocation3 + $0x24] ss:$8 sps:$4 sm:$0xff]   ;;  %v419_v12 = vld [vmem:[#allocation3 + $0x20] ss:$8 sps:$4 sm:$0xff]   ;;  %v420_v13 = vld [vmem:[#allocation3 + $0x14] ss:$8 sps:$4 sm:$0xff]  }
  0x21   :  { %v422_v14 = vld [vmem:[#allocation3 + $0x10] ss:$8 sps:$4 sm:$0xff]   ;;  %v423_v15 = vld [vmem:[#allocation3 + $0x4] ss:$8 sps:$4 sm:$0xff]   ;;  %v425_v16 = vld [vmem:[#allocation3] ss:$8 sps:$4 sm:$0xff]  }
  0x22   :  { %150 = vmatpush1.bf16.msra.mxu0 %v407_v4  ;;  %v427_v18 = vld [vmem:[#allocation5 + $0x38] sm:$0xff]   ;;  %v494_v19 = vmov 0.0   ;;  %v428_v20 = vld [vmem:[#allocation5 + $0x30] sm:$0xff]   ;;  %v429_v21 = vld [vmem:[#allocation5 + $0x28] sm:$0xff]   ;;  %vm495_vm0 = vmmov 0  }
  0x23   :  { %151 = vmatprep.subr.bf16.mxu0 %v408_v5  ;;  %373 = vmatprep.subr.bf16.mxu1 %v494_v19  ;;  %v430_v22 = vld [vmem:[#allocation5 + $0x20] sm:$0xff]   ;;  %v431_v23 = vld [vmem:[#allocation5 + $0x18] sm:$0xff]   ;;  %v432_v24 = vld [vmem:[#allocation5 + $0x10] sm:$0xff]  }
  0x24   :  { %374 = vmatpush3.bf16.msra.mxu1 %v427_v18  ;;  %v433_v25 = vld [vmem:[#allocation5 + $0x8] sm:$0xff]   ;;  %v434_v26 = vld [vmem:[#allocation5] sm:$0xff]   ;;  %389 = vmatprep.mubr.msk.bf16.mxu1 %vm495_vm0, %v494_v19 }
  0x25   :  { %375 = vmatprep.subr.bf16.mxu1 %v494_v19 }
  0x26   :  { %152 = vmatpush1.bf16.msra.mxu0 %v410_v6 }
  0x27   :  { %153 = vmatprep.subr.bf16.mxu0 %v411_v7 }
  0x28   :  { %376 = vmatpush3.bf16.msra.mxu1 %v428_v20 }
  0x29   :  { %377 = vmatprep.subr.bf16.mxu1 %v494_v19 }
  0x2a   :  { %154 = vmatpush1.bf16.msra.mxu0 %v413_v8 }
  0x2b   :  { %155 = vmatprep.subr.bf16.mxu0 %v414_v9 }
  0x2c   :  { %378 = vmatpush3.bf16.msra.mxu1 %v429_v21 }
  0x2d   :  { %379 = vmatprep.subr.bf16.mxu1 %v494_v19 }
  0x2e   :  { %156 = vmatpush1.bf16.msra.mxu0 %v416_v10 }
  0x2f   :  { %157 = vmatprep.subr.bf16.mxu0 %v417_v11 }
  0x30   :  { %380 = vmatpush3.bf16.msra.mxu1 %v430_v22 }
  0x31   :  { %381 = vmatprep.subr.bf16.mxu1 %v494_v19 }
  0x32   :  { %158 = vmatpush1.bf16.msra.mxu0 %v419_v12 }
  0x33   :  { %159 = vmatprep.subr.bf16.mxu0 %v420_v13 }
  0x34   :  { %382 = vmatpush3.bf16.msra.mxu1 %v431_v23 }
  0x35   :  { %383 = vmatprep.subr.bf16.mxu1 %v494_v19 }
  0x36   :  { %160 = vmatpush1.bf16.msra.mxu0 %v422_v14 }
  0x37   :  { %161 = vmatprep.subr.bf16.mxu0 %v423_v15 }
  0x38   :  { %384 = vmatpush3.bf16.msra.mxu1 %v432_v24 }
  0x39   :  { %385 = vmatprep.subr.bf16.mxu1 %v494_v19 }
  0x3a   :  { %162 = vmatpush1.bf16.msra.mxu0 %v425_v16 }
  0x3c   :  { %386 = vmatpush3.bf16.msra.mxu1 %v433_v25 }
  0x3d   :  { %180 = vmatmul.mubr.bf16.vlgmr.msra.gmra.mxu0 %v426_v17  ;;  %387 = vmatprep.subr.bf16.mxu1 %v494_v19 }
  0x40   :  { %388 = vmatpush3.bf16.msra.mxu1 %v434_v26 }
  0xfd   :  { %v181_v27 = vpop.f32.mrf.mxu0 }
  0xfe   :  { %v190_v28 = vsub.f32 0.0, %v181_v27 }
  0xff   :  { %v183_v29 = vpop.f32.mrf.mxu0 }
 0x100   :  { %v192_v30 = vmul.f32 1.442695, %v190_v28 }
 0x101   :  { %v185_v31 = vpop.f32.mrf.mxu0 }
 0x102   :  { %435 = vpow2.f32 %v192_v30  ;;  %v191_v32 = vsub.f32 0.0, %v185_v31 }
 0x103   :  { %v187_v42 = vpop.f32.mrf.mxu0 }
 0x104   :  { %v194_v33 = vmul.f32 1.442695, %v191_v32 }
 0x106   :  { %437 = vpow2.f32 %v194_v33 }
 0x10f   :  { %v436_v34 = vpop.eup %435 }
 0x110   :  { %v196_v35 = vadd.f32 1.0, %v436_v34 }
 0x112   :  { %439 = vrcp.f32 %v196_v35 }
 0x113   :  { %v438_v36 = vpop.eup %437 }
 0x114   :  { %v197_v37 = vadd.f32 1.0, %v438_v36 }
 0x116   :  { %441 = vrcp.f32 %v197_v37 }
 0x11f   :  { %v440_v38 = vpop.eup %439 }
 0x120   :  { %v200_v39 = vmul.f32 %v440_v38, %v181_v27 }
 0x122   :  { %v202_v43 = vmul.f32 %v200_v39, %v183_v29 }
 0x123   :  { %v442_v40 = vpop.eup %441 }
 0x124   :  { %v201_v41 = vmul.f32 %v442_v40, %v185_v31 }
 0x126   :  { %v203_v44 = vmul.f32 %v201_v41, %v187_v42 }
 0x128   :  { %v204_v45 = vpack.c.bf16 %v203_v44, %v202_v43 }
 0x12a   :  { %390 = vmatmul.mubr.bf16.vlgmr.msra.gmra.mxu1 %v204_v45 }
 0x1ea   :  { %v303_v46 = vpop.f32.mrf.mxu1 }
 0x1eb   :  { %331 = vst [vmem:[%s534_s3] sm:$0xff] %v303_v46 }
 0x1ec   :  { %v391_v47 = vpop.f32.mrf.mxu1 }
 0x1ee   :  { %v306_v48 = vpop.f32.mrf.mxu1 }
 0x1ef   :  { %332 = vst [vmem:[%s534_s3 + $0x8] sm:$0xff] %v306_v48 }
 0x1f0   :  { %v392_v49 = vpop.f32.mrf.mxu1 }
 0x1f1   :  { %337 = vsyncpa [#allocation4], 1 }
 0x1f2   :  { %338 = vsyncpa [#allocation6], 1 }

</bundles_post_ra>
